<compile_context>
chip_gen: v5e
topology: v5e:2x2
jax: 0.10.0
libtpu: 0.0.40
codegen_flags: <defaults>
</compile_context>

<pallas_src>
import functools

import jax
import jax.numpy as jnp
from jax import lax
from jax.experimental import pallas as pl
from jax.experimental.pallas import tpu as pltpu

_BIG = 1e9  # finite sentinel for masked max/min (avoids inf arithmetic)


def _triplet_kernel(feat_ref, labc_ref, labr_ref, out_ref, *, margin, m, parts):
    P = parts
    Pm = P * m
    dpad = feat_ref.shape[-1]

    x = feat_ref[...]                    # (P, m, dpad) f32
    lc = labc_ref[...]                   # (P, m, 1) int32
    lr = labr_ref[...]                   # (P, 1, m) int32

    # same-label / different-label masks for all P parts in one compare
    pos3 = lc == lr                      # (P, m, m) bool (diag included)

    # ---- pairwise Euclidean distance (all reductions on the MXU) ----------
    ones3 = jnp.ones((P, 1, dpad), dtype=jnp.float32)
    xsq = x * x
    x2_col = jnp.einsum('pid,pod->pio', xsq, ones3,
                        preferred_element_type=jnp.float32)          # (P, m, 1)
    x2_row = jnp.einsum('pod,pjd->poj', ones3, xsq,
                        preferred_element_type=jnp.float32)          # (P, 1, m)
    prod = jnp.einsum('pid,pjd->pij', x, x,
                      preferred_element_type=jnp.float32)            # (P, m, m)
    dist3 = jnp.sqrt(jnp.maximum(x2_col + x2_row - 2.0 * prod, 0.0))

    mean_dist = jnp.sum(jnp.sum(dist3, axis=2, keepdims=True),
                        axis=1, keepdims=True) * (1.0 / (m * m))     # (P, 1, 1)

    # ---- hard triplet: max positive / min negative per anchor -------------
    pos_dist3 = jnp.where(pos3, dist3, -_BIG)        # hoisted, reused in j-loop
    hard_hp = jnp.max(pos_dist3, axis=2, keepdims=True)              # (P, m, 1)
    hard_hn = jnp.min(jnp.where(pos3, _BIG, dist3), axis=2, keepdims=True)
    hard_loss = jnp.maximum(margin + hard_hp - hard_hn, 0.0)         # (P, m, 1)
    hard_mean = jnp.sum(hard_loss, axis=1, keepdims=True) * (1.0 / m)  # (P,1,1)

    # ---- full triplet: loop over positive index j on the stacked slab -----
    dist2 = dist3.reshape(Pm, m)
    pos_dist2 = pos_dist3.reshape(Pm, m)
    negf2 = jnp.where(pos3, 0.0, 1.0).reshape(Pm, m)                 # f32 mask
    col_iota = lax.broadcasted_iota(jnp.int32, (m, 1), 0)            # hoisted

    def body(j, carry):
        fs, fn = carry
        # one-hot column selector -> MXU matvec picks column j of pos_dist2
        e_j = (col_iota == j).astype(jnp.float32)                    # (m, 1)
        d_pos = lax.dot_general(
            pos_dist2, e_j,
            dimension_numbers=(((1,), (0,)), ((), ())),
            preferred_element_type=jnp.float32)                      # (Pm, 1)
        diff = (margin + d_pos) - dist2                              # (Pm, m)
        vals = jnp.maximum(diff * negf2, 0.0)         # fused neg-mask + relu
        fs = fs + jnp.sum(vals, axis=1, keepdims=True)
        fn = fn + jnp.sum((vals > 0.0).astype(jnp.float32), axis=1, keepdims=True)
        return fs, fn

    zeros_col = jnp.zeros((Pm, 1), jnp.float32)
    fs, fn = lax.fori_loop(0, m, body, (zeros_col, zeros_col),
                           unroll=True if m <= 16 else 4)

    full_sum = jnp.sum(fs.reshape(P, m, 1), axis=1, keepdims=True)   # (P, 1, 1)
    full_num = jnp.sum(fn.reshape(P, m, 1), axis=1, keepdims=True)   # (P, 1, 1)
    full_mean = jnp.where(full_num > 0.0,
                          full_sum / jnp.maximum(full_num, 1.0), 0.0)

    # ---- pack the four per-part scalars into one lane-dense (P,1,128) store
    lane = lax.broadcasted_iota(jnp.int32, (P, 1, 128), 2)
    packed = (jnp.where(lane == 0, full_mean, 0.0)
              + jnp.where(lane == 1, hard_mean, 0.0)
              + jnp.where(lane == 2, mean_dist, 0.0)
              + jnp.where(lane == 3, full_num, 0.0))
    out_ref[...] = packed


def _pick_parts(n):
    # Largest divisor of n that is <= 8 while keeping >= 2 grid steps
    # (so the "parallel" axis can shard across v7x's two TensorCores).
    best = 1
    for p in range(1, n + 1):
        if n % p == 0 and p <= 8 and (n // p >= 2 or n < 2):
            best = p
    return best


def triplet_loss(feature, label, margin, parts_per_step=None):
    """Returns (full_loss_metric_mean, hard_loss_metric_mean, mean_dist,
    full_loss_num), each of shape (n,), matching TripletLoss.forward."""
    n, m, d = feature.shape
    feature = feature.astype(jnp.float32)
    label = label.astype(jnp.int32)

    # Pad the feature dim to a multiple of 128 (zeros do not change distances)
    # so the MXU contraction and the x-tile are lane-dense.
    dpad = ((d + 127) // 128) * 128
    if dpad != d:
        feature = jnp.pad(feature, ((0, 0), (0, 0), (0, dpad - d)))

    if parts_per_step is None:
        parts_per_step = _pick_parts(n)
    if n % parts_per_step != 0:
        parts_per_step = 1
    P = parts_per_step

    lab_col = label.reshape(n, m, 1)
    lab_row = label.reshape(n, 1, m)

    kernel = functools.partial(_triplet_kernel, margin=float(margin), m=m, parts=P)

    out = pl.pallas_call(
        kernel,
        out_shape=jax.ShapeDtypeStruct((n, 1, 128), jnp.float32),
        grid_spec=pltpu.PrefetchScalarGridSpec(
            num_scalar_prefetch=0,
            grid=(n // P,),
            in_specs=[
                pl.BlockSpec((P, m, dpad), lambda i: (i, 0, 0)),
                pl.BlockSpec((P, m, 1), lambda i: (i, 0, 0)),
                pl.BlockSpec((P, 1, m), lambda i: (i, 0, 0)),
            ],
            out_specs=pl.BlockSpec((P, 1, 128), lambda i: (i, 0, 0)),
        ),
        compiler_params=pltpu.CompilerParams(dimension_semantics=("parallel",)),
    )(feature, lab_col, lab_row)

    out = out[:, 0, :]   # (n, 128) -> only the first 4 lanes carry data
    return out[:, 0], out[:, 1], out[:, 2], out[:, 3]


if __name__ == "__main__":
    key = jax.random.PRNGKey(0)
    n, m, d = 4, 8, 32          # (parts, batch, feat_dim)
    feature = jax.random.normal(key, (n, m, d), dtype=jnp.float32)
    # labels: p=2 classes x k=4 samples (uniform counts, as the module assumes),
    # replicated across the n parts like GaitSet does.
    label_row = jnp.array([0, 0, 0, 0, 1, 1, 1, 1], dtype=jnp.int32)
    label = jnp.tile(label_row[None, :], (n, 1))
    margin = 0.2

    outs = triplet_loss(feature, label, margin)
    jax.block_until_ready(outs)
    print("KERNEL_OK")
</pallas_src>

<mosaic_0001>
module attributes {stable_mosaic.version = 11 : i64} {
  func.func @_triplet_kernel(%arg0: i32, %arg1: memref<2x8x128xf32, #tpu.memory_space<vmem>>, %arg2: memref<2x8x1xi32, #tpu.memory_space<vmem>>, %arg3: memref<2x1x8xi32, #tpu.memory_space<vmem>>, %arg4: memref<2x1x128xf32, #tpu.memory_space<vmem>>) attributes {dimension_semantics = [#tpu.dimension_semantics<parallel>], iteration_bounds = array<i64: 2>, scalar_prefetch = 0 : i64, scratch_operands = 0 : i64, tpu.core_type = #tpu.core_type<tc>, window_params = [{transform_indices = @transform_0, window_bounds = array<i64: 2, 8, 128>}, {transform_indices = @transform_1, window_bounds = array<i64: 2, 8, 1>}, {transform_indices = @transform_2, window_bounds = array<i64: 2, 1, 8>}, {transform_indices = @transform_3, window_bounds = array<i64: 2, 1, 128>}]} {
    %c0 = arith.constant 0 : index
    %c0_0 = arith.constant 0 : index
    %c0_1 = arith.constant 0 : index
    %0 = vector.load %arg1[%c0, %c0_0, %c0_1] : memref<2x8x128xf32, #tpu.memory_space<vmem>>, vector<2x8x128xf32>
    %c0_2 = arith.constant 0 : index
    %c0_3 = arith.constant 0 : index
    %c0_4 = arith.constant 0 : index
    %1 = vector.load %arg2[%c0_2, %c0_3, %c0_4] : memref<2x8x1xi32, #tpu.memory_space<vmem>>, vector<2x8x1xi32>
    %c0_5 = arith.constant 0 : index
    %c0_6 = arith.constant 0 : index
    %c0_7 = arith.constant 0 : index
    %2 = vector.load %arg3[%c0_5, %c0_6, %c0_7] : memref<2x1x8xi32, #tpu.memory_space<vmem>>, vector<2x1x8xi32>
    %3 = vector.broadcast %1 : vector<2x8x1xi32> to vector<2x8x8xi32>
    %4 = vector.broadcast %2 : vector<2x1x8xi32> to vector<2x8x8xi32>
    %5 = arith.cmpi eq, %3, %4 : vector<2x8x8xi32>
    %cst = arith.constant 1.000000e+00 : f32
    %6 = vector.broadcast %cst : f32 to vector<2x1x128xf32>
    %7 = arith.mulf %0, %0 : vector<2x8x128xf32>
    "tpu.trace_start"() <{level = 10 : i32, message = "pid,pod->pio"}> : () -> ()
    %cst_8 = arith.constant dense<0.000000e+00> : vector<2x8x1xf32>
    %8 = tpu.matmul %7, %6, %cst_8 {dimension_numbers = #tpu.dot_dimension_numbers<[2], [2], [1], [1], [0, 0, 0, 1, 1, 1], [0], [0]>} : vector<2x8x128xf32>, vector<2x1x128xf32>, vector<2x8x1xf32> -> vector<2x8x1xf32>
    "tpu.trace_stop"() : () -> ()
    "tpu.trace_start"() <{level = 10 : i32, message = "pod,pjd->poj"}> : () -> ()
    %cst_9 = arith.constant dense<0.000000e+00> : vector<2x1x8xf32>
    %9 = tpu.matmul %6, %7, %cst_9 {dimension_numbers = #tpu.dot_dimension_numbers<[2], [2], [1], [1], [0, 0, 0, 1, 1, 1], [0], [0]>} : vector<2x1x128xf32>, vector<2x8x128xf32>, vector<2x1x8xf32> -> vector<2x1x8xf32>
    "tpu.trace_stop"() : () -> ()
    "tpu.trace_start"() <{level = 10 : i32, message = "pid,pjd->pij"}> : () -> ()
    %cst_10 = arith.constant dense<0.000000e+00> : vector<2x8x8xf32>
    %10 = tpu.matmul %0, %0, %cst_10 {dimension_numbers = #tpu.dot_dimension_numbers<[2], [2], [1], [1], [0, 0, 0, 1, 1, 1], [0], [0]>} : vector<2x8x128xf32>, vector<2x8x128xf32>, vector<2x8x8xf32> -> vector<2x8x8xf32>
    "tpu.trace_stop"() : () -> ()
    %11 = vector.broadcast %8 : vector<2x8x1xf32> to vector<2x8x8xf32>
    %12 = vector.broadcast %9 : vector<2x1x8xf32> to vector<2x8x8xf32>
    %13 = arith.addf %11, %12 : vector<2x8x8xf32>
    %cst_11 = arith.constant 2.000000e+00 : f32
    %14 = vector.broadcast %cst_11 : f32 to vector<2x8x8xf32>
    %15 = arith.mulf %14, %10 : vector<2x8x8xf32>
    %16 = arith.subf %13, %15 : vector<2x8x8xf32>
    %cst_12 = arith.constant 0.000000e+00 : f32
    %17 = vector.broadcast %cst_12 : f32 to vector<2x8x8xf32>
    %18 = arith.maximumf %16, %17 : vector<2x8x8xf32>
    %19 = math.sqrt %18 : vector<2x8x8xf32>
    %cst_13 = arith.constant dense<0.000000e+00> : vector<2x8xf32>
    %20 = vector.multi_reduction <add>, %19, %cst_13 [2] : vector<2x8x8xf32> to vector<2x8xf32>
    %21 = vector.shape_cast %20 : vector<2x8xf32> to vector<2x8x1xf32>
    %cst_14 = arith.constant dense<0.000000e+00> : vector<2x1xf32>
    %22 = vector.multi_reduction <add>, %21, %cst_14 [1] : vector<2x8x1xf32> to vector<2x1xf32>
    %23 = vector.shape_cast %22 : vector<2x1xf32> to vector<2x1x1xf32>
    %cst_15 = arith.constant 1.562500e-02 : f32
    %24 = vector.broadcast %cst_15 : f32 to vector<2x1x1xf32>
    %25 = arith.mulf %23, %24 : vector<2x1x1xf32>
    %cst_16 = arith.constant -1.000000e+09 : f32
    %26 = vector.broadcast %cst_16 : f32 to vector<2x8x8xf32>
    %27 = arith.select %5, %19, %26 : vector<2x8x8xi1>, vector<2x8x8xf32>
    %cst_17 = arith.constant dense<0xFF800000> : vector<2x8xf32>
    %28 = vector.multi_reduction <maximumf>, %27, %cst_17 [2] : vector<2x8x8xf32> to vector<2x8xf32>
    %29 = vector.shape_cast %28 : vector<2x8xf32> to vector<2x8x1xf32>
    %cst_18 = arith.constant 1.000000e+09 : f32
    %30 = vector.broadcast %cst_18 : f32 to vector<2x8x8xf32>
    %31 = arith.select %5, %30, %19 : vector<2x8x8xi1>, vector<2x8x8xf32>
    %cst_19 = arith.constant dense<0x7F800000> : vector<2x8xf32>
    %32 = vector.multi_reduction <minimumf>, %31, %cst_19 [2] : vector<2x8x8xf32> to vector<2x8xf32>
    %33 = vector.shape_cast %32 : vector<2x8xf32> to vector<2x8x1xf32>
    %cst_20 = arith.constant 2.000000e-01 : f32
    %34 = vector.broadcast %cst_20 : f32 to vector<2x8x1xf32>
    %35 = arith.addf %34, %29 : vector<2x8x1xf32>
    %36 = arith.subf %35, %33 : vector<2x8x1xf32>
    %cst_21 = arith.constant 0.000000e+00 : f32
    %37 = vector.broadcast %cst_21 : f32 to vector<2x8x1xf32>
    %38 = arith.maximumf %36, %37 : vector<2x8x1xf32>
    %cst_22 = arith.constant dense<0.000000e+00> : vector<2x1xf32>
    %39 = vector.multi_reduction <add>, %38, %cst_22 [1] : vector<2x8x1xf32> to vector<2x1xf32>
    %40 = vector.shape_cast %39 : vector<2x1xf32> to vector<2x1x1xf32>
    %cst_23 = arith.constant 1.250000e-01 : f32
    %41 = vector.broadcast %cst_23 : f32 to vector<2x1x1xf32>
    %42 = arith.mulf %40, %41 : vector<2x1x1xf32>
    %43 = vector.shape_cast %19 : vector<2x8x8xf32> to vector<16x8xf32>
    %44 = vector.shape_cast %27 : vector<2x8x8xf32> to vector<16x8xf32>
    %cst_24 = arith.constant 0.000000e+00 : f32
    %cst_25 = arith.constant 1.000000e+00 : f32
    %45 = vector.broadcast %cst_24 : f32 to vector<2x8x8xf32>
    %46 = vector.broadcast %cst_25 : f32 to vector<2x8x8xf32>
    %47 = arith.select %5, %45, %46 : vector<2x8x8xi1>, vector<2x8x8xf32>
    %48 = vector.shape_cast %47 : vector<2x8x8xf32> to vector<16x8xf32>
    %49 = tpu.iota {dimensions = array<i32: 0>} : vector<8x1xi32>
    %cst_26 = arith.constant 0.000000e+00 : f32
    %50 = vector.broadcast %cst_26 : f32 to vector<16x1xf32>
    %c0_i32 = arith.constant 0 : i32
    %51 = vector.broadcast %c0_i32 : i32 to vector<8x1xi32>
    %52 = arith.cmpi eq, %49, %51 : vector<8x1xi32>
    %53 = arith.extui %52 : vector<8x1xi1> to vector<8x1xi32>
    %54 = arith.sitofp %53 : vector<8x1xi32> to vector<8x1xf32>
    %cst_27 = arith.constant dense<0.000000e+00> : vector<16x1xf32>
    %55 = tpu.matmul %44, %54, %cst_27 {dimension_numbers = #tpu.dot_dimension_numbers<[1], [0], [0], [1], [0, 0, 1, 1], [], []>} : vector<16x8xf32>, vector<8x1xf32>, vector<16x1xf32> -> vector<16x1xf32>
    %cst_28 = arith.constant 2.000000e-01 : f32
    %56 = vector.broadcast %cst_28 : f32 to vector<16x1xf32>
    %57 = arith.addf %56, %55 : vector<16x1xf32>
    %58 = vector.broadcast %57 : vector<16x1xf32> to vector<16x8xf32>
    %59 = arith.subf %58, %43 : vector<16x8xf32>
    %60 = arith.mulf %59, %48 : vector<16x8xf32>
    %cst_29 = arith.constant 0.000000e+00 : f32
    %61 = vector.broadcast %cst_29 : f32 to vector<16x8xf32>
    %62 = arith.maximumf %60, %61 : vector<16x8xf32>
    %cst_30 = arith.constant dense<0.000000e+00> : vector<16xf32>
    %63 = vector.multi_reduction <add>, %62, %cst_30 [1] : vector<16x8xf32> to vector<16xf32>
    %64 = vector.shape_cast %63 : vector<16xf32> to vector<16x1xf32>
    %65 = arith.addf %50, %64 : vector<16x1xf32>
    %cst_31 = arith.constant 0.000000e+00 : f32
    %66 = vector.broadcast %cst_31 : f32 to vector<16x8xf32>
    %67 = arith.cmpf ogt, %62, %66 : vector<16x8xf32>
    %68 = arith.extui %67 : vector<16x8xi1> to vector<16x8xi32>
    %69 = arith.sitofp %68 : vector<16x8xi32> to vector<16x8xf32>
    %cst_32 = arith.constant dense<0.000000e+00> : vector<16xf32>
    %70 = vector.multi_reduction <add>, %69, %cst_32 [1] : vector<16x8xf32> to vector<16xf32>
    %71 = vector.shape_cast %70 : vector<16xf32> to vector<16x1xf32>
    %72 = arith.addf %50, %71 : vector<16x1xf32>
    %c1_i32 = arith.constant 1 : i32
    %73 = vector.broadcast %c1_i32 : i32 to vector<8x1xi32>
    %74 = arith.cmpi eq, %49, %73 : vector<8x1xi32>
    %75 = arith.extui %74 : vector<8x1xi1> to vector<8x1xi32>
    %76 = arith.sitofp %75 : vector<8x1xi32> to vector<8x1xf32>
    %cst_33 = arith.constant dense<0.000000e+00> : vector<16x1xf32>
    %77 = tpu.matmul %44, %76, %cst_33 {dimension_numbers = #tpu.dot_dimension_numbers<[1], [0], [0], [1], [0, 0, 1, 1], [], []>} : vector<16x8xf32>, vector<8x1xf32>, vector<16x1xf32> -> vector<16x1xf32>
    %cst_34 = arith.constant 2.000000e-01 : f32
    %78 = vector.broadcast %cst_34 : f32 to vector<16x1xf32>
    %79 = arith.addf %78, %77 : vector<16x1xf32>
    %80 = vector.broadcast %79 : vector<16x1xf32> to vector<16x8xf32>
    %81 = arith.subf %80, %43 : vector<16x8xf32>
    %82 = arith.mulf %81, %48 : vector<16x8xf32>
    %cst_35 = arith.constant 0.000000e+00 : f32
    %83 = vector.broadcast %cst_35 : f32 to vector<16x8xf32>
    %84 = arith.maximumf %82, %83 : vector<16x8xf32>
    %cst_36 = arith.constant dense<0.000000e+00> : vector<16xf32>
    %85 = vector.multi_reduction <add>, %84, %cst_36 [1] : vector<16x8xf32> to vector<16xf32>
    %86 = vector.shape_cast %85 : vector<16xf32> to vector<16x1xf32>
    %87 = arith.addf %65, %86 : vector<16x1xf32>
    %cst_37 = arith.constant 0.000000e+00 : f32
    %88 = vector.broadcast %cst_37 : f32 to vector<16x8xf32>
    %89 = arith.cmpf ogt, %84, %88 : vector<16x8xf32>
    %90 = arith.extui %89 : vector<16x8xi1> to vector<16x8xi32>
    %91 = arith.sitofp %90 : vector<16x8xi32> to vector<16x8xf32>
    %cst_38 = arith.constant dense<0.000000e+00> : vector<16xf32>
    %92 = vector.multi_reduction <add>, %91, %cst_38 [1] : vector<16x8xf32> to vector<16xf32>
    %93 = vector.shape_cast %92 : vector<16xf32> to vector<16x1xf32>
    %94 = arith.addf %72, %93 : vector<16x1xf32>
    %c2_i32 = arith.constant 2 : i32
    %95 = vector.broadcast %c2_i32 : i32 to vector<8x1xi32>
    %96 = arith.cmpi eq, %49, %95 : vector<8x1xi32>
    %97 = arith.extui %96 : vector<8x1xi1> to vector<8x1xi32>
    %98 = arith.sitofp %97 : vector<8x1xi32> to vector<8x1xf32>
    %cst_39 = arith.constant dense<0.000000e+00> : vector<16x1xf32>
    %99 = tpu.matmul %44, %98, %cst_39 {dimension_numbers = #tpu.dot_dimension_numbers<[1], [0], [0], [1], [0, 0, 1, 1], [], []>} : vector<16x8xf32>, vector<8x1xf32>, vector<16x1xf32> -> vector<16x1xf32>
    %cst_40 = arith.constant 2.000000e-01 : f32
    %100 = vector.broadcast %cst_40 : f32 to vector<16x1xf32>
    %101 = arith.addf %100, %99 : vector<16x1xf32>
    %102 = vector.broadcast %101 : vector<16x1xf32> to vector<16x8xf32>
    %103 = arith.subf %102, %43 : vector<16x8xf32>
    %104 = arith.mulf %103, %48 : vector<16x8xf32>
    %cst_41 = arith.constant 0.000000e+00 : f32
    %105 = vector.broadcast %cst_41 : f32 to vector<16x8xf32>
    %106 = arith.maximumf %104, %105 : vector<16x8xf32>
    %cst_42 = arith.constant dense<0.000000e+00> : vector<16xf32>
    %107 = vector.multi_reduction <add>, %106, %cst_42 [1] : vector<16x8xf32> to vector<16xf32>
    %108 = vector.shape_cast %107 : vector<16xf32> to vector<16x1xf32>
    %109 = arith.addf %87, %108 : vector<16x1xf32>
    %cst_43 = arith.constant 0.000000e+00 : f32
    %110 = vector.broadcast %cst_43 : f32 to vector<16x8xf32>
    %111 = arith.cmpf ogt, %106, %110 : vector<16x8xf32>
    %112 = arith.extui %111 : vector<16x8xi1> to vector<16x8xi32>
    %113 = arith.sitofp %112 : vector<16x8xi32> to vector<16x8xf32>
    %cst_44 = arith.constant dense<0.000000e+00> : vector<16xf32>
    %114 = vector.multi_reduction <add>, %113, %cst_44 [1] : vector<16x8xf32> to vector<16xf32>
    %115 = vector.shape_cast %114 : vector<16xf32> to vector<16x1xf32>
    %116 = arith.addf %94, %115 : vector<16x1xf32>
    %c3_i32 = arith.constant 3 : i32
    %117 = vector.broadcast %c3_i32 : i32 to vector<8x1xi32>
    %118 = arith.cmpi eq, %49, %117 : vector<8x1xi32>
    %119 = arith.extui %118 : vector<8x1xi1> to vector<8x1xi32>
    %120 = arith.sitofp %119 : vector<8x1xi32> to vector<8x1xf32>
    %cst_45 = arith.constant dense<0.000000e+00> : vector<16x1xf32>
    %121 = tpu.matmul %44, %120, %cst_45 {dimension_numbers = #tpu.dot_dimension_numbers<[1], [0], [0], [1], [0, 0, 1, 1], [], []>} : vector<16x8xf32>, vector<8x1xf32>, vector<16x1xf32> -> vector<16x1xf32>
    %cst_46 = arith.constant 2.000000e-01 : f32
    %122 = vector.broadcast %cst_46 : f32 to vector<16x1xf32>
    %123 = arith.addf %122, %121 : vector<16x1xf32>
    %124 = vector.broadcast %123 : vector<16x1xf32> to vector<16x8xf32>
    %125 = arith.subf %124, %43 : vector<16x8xf32>
    %126 = arith.mulf %125, %48 : vector<16x8xf32>
    %cst_47 = arith.constant 0.000000e+00 : f32
    %127 = vector.broadcast %cst_47 : f32 to vector<16x8xf32>
    %128 = arith.maximumf %126, %127 : vector<16x8xf32>
    %cst_48 = arith.constant dense<0.000000e+00> : vector<16xf32>
    %129 = vector.multi_reduction <add>, %128, %cst_48 [1] : vector<16x8xf32> to vector<16xf32>
    %130 = vector.shape_cast %129 : vector<16xf32> to vector<16x1xf32>
    %131 = arith.addf %109, %130 : vector<16x1xf32>
    %cst_49 = arith.constant 0.000000e+00 : f32
    %132 = vector.broadcast %cst_49 : f32 to vector<16x8xf32>
    %133 = arith.cmpf ogt, %128, %132 : vector<16x8xf32>
    %134 = arith.extui %133 : vector<16x8xi1> to vector<16x8xi32>
    %135 = arith.sitofp %134 : vector<16x8xi32> to vector<16x8xf32>
    %cst_50 = arith.constant dense<0.000000e+00> : vector<16xf32>
    %136 = vector.multi_reduction <add>, %135, %cst_50 [1] : vector<16x8xf32> to vector<16xf32>
    %137 = vector.shape_cast %136 : vector<16xf32> to vector<16x1xf32>
    %138 = arith.addf %116, %137 : vector<16x1xf32>
    %c4_i32 = arith.constant 4 : i32
    %139 = vector.broadcast %c4_i32 : i32 to vector<8x1xi32>
    %140 = arith.cmpi eq, %49, %139 : vector<8x1xi32>
    %141 = arith.extui %140 : vector<8x1xi1> to vector<8x1xi32>
    %142 = arith.sitofp %141 : vector<8x1xi32> to vector<8x1xf32>
    %cst_51 = arith.constant dense<0.000000e+00> : vector<16x1xf32>
    %143 = tpu.matmul %44, %142, %cst_51 {dimension_numbers = #tpu.dot_dimension_numbers<[1], [0], [0], [1], [0, 0, 1, 1], [], []>} : vector<16x8xf32>, vector<8x1xf32>, vector<16x1xf32> -> vector<16x1xf32>
    %cst_52 = arith.constant 2.000000e-01 : f32
    %144 = vector.broadcast %cst_52 : f32 to vector<16x1xf32>
    %145 = arith.addf %144, %143 : vector<16x1xf32>
    %146 = vector.broadcast %145 : vector<16x1xf32> to vector<16x8xf32>
    %147 = arith.subf %146, %43 : vector<16x8xf32>
    %148 = arith.mulf %147, %48 : vector<16x8xf32>
    %cst_53 = arith.constant 0.000000e+00 : f32
    %149 = vector.broadcast %cst_53 : f32 to vector<16x8xf32>
    %150 = arith.maximumf %148, %149 : vector<16x8xf32>
    %cst_54 = arith.constant dense<0.000000e+00> : vector<16xf32>
    %151 = vector.multi_reduction <add>, %150, %cst_54 [1] : vector<16x8xf32> to vector<16xf32>
    %152 = vector.shape_cast %151 : vector<16xf32> to vector<16x1xf32>
    %153 = arith.addf %131, %152 : vector<16x1xf32>
    %cst_55 = arith.constant 0.000000e+00 : f32
    %154 = vector.broadcast %cst_55 : f32 to vector<16x8xf32>
    %155 = arith.cmpf ogt, %150, %154 : vector<16x8xf32>
    %156 = arith.extui %155 : vector<16x8xi1> to vector<16x8xi32>
    %157 = arith.sitofp %156 : vector<16x8xi32> to vector<16x8xf32>
    %cst_56 = arith.constant dense<0.000000e+00> : vector<16xf32>
    %158 = vector.multi_reduction <add>, %157, %cst_56 [1] : vector<16x8xf32> to vector<16xf32>
    %159 = vector.shape_cast %158 : vector<16xf32> to vector<16x1xf32>
    %160 = arith.addf %138, %159 : vector<16x1xf32>
    %c5_i32 = arith.constant 5 : i32
    %161 = vector.broadcast %c5_i32 : i32 to vector<8x1xi32>
    %162 = arith.cmpi eq, %49, %161 : vector<8x1xi32>
    %163 = arith.extui %162 : vector<8x1xi1> to vector<8x1xi32>
    %164 = arith.sitofp %163 : vector<8x1xi32> to vector<8x1xf32>
    %cst_57 = arith.constant dense<0.000000e+00> : vector<16x1xf32>
    %165 = tpu.matmul %44, %164, %cst_57 {dimension_numbers = #tpu.dot_dimension_numbers<[1], [0], [0], [1], [0, 0, 1, 1], [], []>} : vector<16x8xf32>, vector<8x1xf32>, vector<16x1xf32> -> vector<16x1xf32>
    %cst_58 = arith.constant 2.000000e-01 : f32
    %166 = vector.broadcast %cst_58 : f32 to vector<16x1xf32>
    %167 = arith.addf %166, %165 : vector<16x1xf32>
    %168 = vector.broadcast %167 : vector<16x1xf32> to vector<16x8xf32>
    %169 = arith.subf %168, %43 : vector<16x8xf32>
    %170 = arith.mulf %169, %48 : vector<16x8xf32>
    %cst_59 = arith.constant 0.000000e+00 : f32
    %171 = vector.broadcast %cst_59 : f32 to vector<16x8xf32>
    %172 = arith.maximumf %170, %171 : vector<16x8xf32>
    %cst_60 = arith.constant dense<0.000000e+00> : vector<16xf32>
    %173 = vector.multi_reduction <add>, %172, %cst_60 [1] : vector<16x8xf32> to vector<16xf32>
    %174 = vector.shape_cast %173 : vector<16xf32> to vector<16x1xf32>
    %175 = arith.addf %153, %174 : vector<16x1xf32>
    %cst_61 = arith.constant 0.000000e+00 : f32
    %176 = vector.broadcast %cst_61 : f32 to vector<16x8xf32>
    %177 = arith.cmpf ogt, %172, %176 : vector<16x8xf32>
    %178 = arith.extui %177 : vector<16x8xi1> to vector<16x8xi32>
    %179 = arith.sitofp %178 : vector<16x8xi32> to vector<16x8xf32>
    %cst_62 = arith.constant dense<0.000000e+00> : vector<16xf32>
    %180 = vector.multi_reduction <add>, %179, %cst_62 [1] : vector<16x8xf32> to vector<16xf32>
    %181 = vector.shape_cast %180 : vector<16xf32> to vector<16x1xf32>
    %182 = arith.addf %160, %181 : vector<16x1xf32>
    %c6_i32 = arith.constant 6 : i32
    %183 = vector.broadcast %c6_i32 : i32 to vector<8x1xi32>
    %184 = arith.cmpi eq, %49, %183 : vector<8x1xi32>
    %185 = arith.extui %184 : vector<8x1xi1> to vector<8x1xi32>
    %186 = arith.sitofp %185 : vector<8x1xi32> to vector<8x1xf32>
    %cst_63 = arith.constant dense<0.000000e+00> : vector<16x1xf32>
    %187 = tpu.matmul %44, %186, %cst_63 {dimension_numbers = #tpu.dot_dimension_numbers<[1], [0], [0], [1], [0, 0, 1, 1], [], []>} : vector<16x8xf32>, vector<8x1xf32>, vector<16x1xf32> -> vector<16x1xf32>
    %cst_64 = arith.constant 2.000000e-01 : f32
    %188 = vector.broadcast %cst_64 : f32 to vector<16x1xf32>
    %189 = arith.addf %188, %187 : vector<16x1xf32>
    %190 = vector.broadcast %189 : vector<16x1xf32> to vector<16x8xf32>
    %191 = arith.subf %190, %43 : vector<16x8xf32>
    %192 = arith.mulf %191, %48 : vector<16x8xf32>
    %cst_65 = arith.constant 0.000000e+00 : f32
    %193 = vector.broadcast %cst_65 : f32 to vector<16x8xf32>
    %194 = arith.maximumf %192, %193 : vector<16x8xf32>
    %cst_66 = arith.constant dense<0.000000e+00> : vector<16xf32>
    %195 = vector.multi_reduction <add>, %194, %cst_66 [1] : vector<16x8xf32> to vector<16xf32>
    %196 = vector.shape_cast %195 : vector<16xf32> to vector<16x1xf32>
    %197 = arith.addf %175, %196 : vector<16x1xf32>
    %cst_67 = arith.constant 0.000000e+00 : f32
    %198 = vector.broadcast %cst_67 : f32 to vector<16x8xf32>
    %199 = arith.cmpf ogt, %194, %198 : vector<16x8xf32>
    %200 = arith.extui %199 : vector<16x8xi1> to vector<16x8xi32>
    %201 = arith.sitofp %200 : vector<16x8xi32> to vector<16x8xf32>
    %cst_68 = arith.constant dense<0.000000e+00> : vector<16xf32>
    %202 = vector.multi_reduction <add>, %201, %cst_68 [1] : vector<16x8xf32> to vector<16xf32>
    %203 = vector.shape_cast %202 : vector<16xf32> to vector<16x1xf32>
    %204 = arith.addf %182, %203 : vector<16x1xf32>
    %c7_i32 = arith.constant 7 : i32
    %205 = vector.broadcast %c7_i32 : i32 to vector<8x1xi32>
    %206 = arith.cmpi eq, %49, %205 : vector<8x1xi32>
    %207 = arith.extui %206 : vector<8x1xi1> to vector<8x1xi32>
    %208 = arith.sitofp %207 : vector<8x1xi32> to vector<8x1xf32>
    %cst_69 = arith.constant dense<0.000000e+00> : vector<16x1xf32>
    %209 = tpu.matmul %44, %208, %cst_69 {dimension_numbers = #tpu.dot_dimension_numbers<[1], [0], [0], [1], [0, 0, 1, 1], [], []>} : vector<16x8xf32>, vector<8x1xf32>, vector<16x1xf32> -> vector<16x1xf32>
    %cst_70 = arith.constant 2.000000e-01 : f32
    %210 = vector.broadcast %cst_70 : f32 to vector<16x1xf32>
    %211 = arith.addf %210, %209 : vector<16x1xf32>
    %212 = vector.broadcast %211 : vector<16x1xf32> to vector<16x8xf32>
    %213 = arith.subf %212, %43 : vector<16x8xf32>
    %214 = arith.mulf %213, %48 : vector<16x8xf32>
    %cst_71 = arith.constant 0.000000e+00 : f32
    %215 = vector.broadcast %cst_71 : f32 to vector<16x8xf32>
    %216 = arith.maximumf %214, %215 : vector<16x8xf32>
    %cst_72 = arith.constant dense<0.000000e+00> : vector<16xf32>
    %217 = vector.multi_reduction <add>, %216, %cst_72 [1] : vector<16x8xf32> to vector<16xf32>
    %218 = vector.shape_cast %217 : vector<16xf32> to vector<16x1xf32>
    %219 = arith.addf %197, %218 : vector<16x1xf32>
    %cst_73 = arith.constant 0.000000e+00 : f32
    %220 = vector.broadcast %cst_73 : f32 to vector<16x8xf32>
    %221 = arith.cmpf ogt, %216, %220 : vector<16x8xf32>
    %222 = arith.extui %221 : vector<16x8xi1> to vector<16x8xi32>
    %223 = arith.sitofp %222 : vector<16x8xi32> to vector<16x8xf32>
    %cst_74 = arith.constant dense<0.000000e+00> : vector<16xf32>
    %224 = vector.multi_reduction <add>, %223, %cst_74 [1] : vector<16x8xf32> to vector<16xf32>
    %225 = vector.shape_cast %224 : vector<16xf32> to vector<16x1xf32>
    %226 = arith.addf %204, %225 : vector<16x1xf32>
    %c8_i32 = arith.constant 8 : i32
    %227 = vector.shape_cast %219 : vector<16x1xf32> to vector<2x8x1xf32>
    %cst_75 = arith.constant dense<0.000000e+00> : vector<2x1xf32>
    %228 = vector.multi_reduction <add>, %227, %cst_75 [1] : vector<2x8x1xf32> to vector<2x1xf32>
    %229 = vector.shape_cast %228 : vector<2x1xf32> to vector<2x1x1xf32>
    %230 = vector.shape_cast %226 : vector<16x1xf32> to vector<2x8x1xf32>
    %cst_76 = arith.constant dense<0.000000e+00> : vector<2x1xf32>
    %231 = vector.multi_reduction <add>, %230, %cst_76 [1] : vector<2x8x1xf32> to vector<2x1xf32>
    %232 = vector.shape_cast %231 : vector<2x1xf32> to vector<2x1x1xf32>
    %cst_77 = arith.constant 0.000000e+00 : f32
    %233 = vector.broadcast %cst_77 : f32 to vector<2x1x1xf32>
    %234 = arith.cmpf ogt, %232, %233 : vector<2x1x1xf32>
    %cst_78 = arith.constant 1.000000e+00 : f32
    %235 = vector.broadcast %cst_78 : f32 to vector<2x1x1xf32>
    %236 = arith.maximumf %232, %235 : vector<2x1x1xf32>
    %237 = arith.divf %229, %236 : vector<2x1x1xf32>
    %cst_79 = arith.constant 0.000000e+00 : f32
    %238 = vector.broadcast %cst_79 : f32 to vector<2x1x1xf32>
    %239 = arith.select %234, %237, %238 : vector<2x1x1xi1>, vector<2x1x1xf32>
    %240 = tpu.iota {dimensions = array<i32: 2>} : vector<2x1x128xi32>
    %c0_i32_80 = arith.constant 0 : i32
    %241 = vector.broadcast %c0_i32_80 : i32 to vector<2x1x128xi32>
    %242 = arith.cmpi eq, %240, %241 : vector<2x1x128xi32>
    %cst_81 = arith.constant 0.000000e+00 : f32
    %243 = vector.shape_cast %239 : vector<2x1x1xf32> to vector<2x1x1xf32>
    %244 = vector.broadcast %243 : vector<2x1x1xf32> to vector<2x1x128xf32>
    %245 = vector.broadcast %cst_81 : f32 to vector<2x1x128xf32>
    %246 = arith.select %242, %244, %245 : vector<2x1x128xi1>, vector<2x1x128xf32>
    %c1_i32_82 = arith.constant 1 : i32
    %247 = vector.broadcast %c1_i32_82 : i32 to vector<2x1x128xi32>
    %248 = arith.cmpi eq, %240, %247 : vector<2x1x128xi32>
    %cst_83 = arith.constant 0.000000e+00 : f32
    %249 = vector.shape_cast %42 : vector<2x1x1xf32> to vector<2x1x1xf32>
    %250 = vector.broadcast %249 : vector<2x1x1xf32> to vector<2x1x128xf32>
    %251 = vector.broadcast %cst_83 : f32 to vector<2x1x128xf32>
    %252 = arith.select %248, %250, %251 : vector<2x1x128xi1>, vector<2x1x128xf32>
    %253 = arith.addf %246, %252 : vector<2x1x128xf32>
    %c2_i32_84 = arith.constant 2 : i32
    %254 = vector.broadcast %c2_i32_84 : i32 to vector<2x1x128xi32>
    %255 = arith.cmpi eq, %240, %254 : vector<2x1x128xi32>
    %cst_85 = arith.constant 0.000000e+00 : f32
    %256 = vector.shape_cast %25 : vector<2x1x1xf32> to vector<2x1x1xf32>
    %257 = vector.broadcast %256 : vector<2x1x1xf32> to vector<2x1x128xf32>
    %258 = vector.broadcast %cst_85 : f32 to vector<2x1x128xf32>
    %259 = arith.select %255, %257, %258 : vector<2x1x128xi1>, vector<2x1x128xf32>
    %260 = arith.addf %253, %259 : vector<2x1x128xf32>
    %c3_i32_86 = arith.constant 3 : i32
    %261 = vector.broadcast %c3_i32_86 : i32 to vector<2x1x128xi32>
    %262 = arith.cmpi eq, %240, %261 : vector<2x1x128xi32>
    %cst_87 = arith.constant 0.000000e+00 : f32
    %263 = vector.shape_cast %232 : vector<2x1x1xf32> to vector<2x1x1xf32>
    %264 = vector.broadcast %263 : vector<2x1x1xf32> to vector<2x1x128xf32>
    %265 = vector.broadcast %cst_87 : f32 to vector<2x1x128xf32>
    %266 = arith.select %262, %264, %265 : vector<2x1x128xi1>, vector<2x1x128xf32>
    %267 = arith.addf %260, %266 : vector<2x1x128xf32>
    %c0_88 = arith.constant 0 : index
    %c0_89 = arith.constant 0 : index
    %c0_90 = arith.constant 0 : index
    %268 = vector.load %arg4[%c0_88, %c0_89, %c0_90] : memref<2x1x128xf32, #tpu.memory_space<vmem>>, vector<2x1x128xf32>
    tpu.vector_store %arg4[%c0_88, %c0_89, %c0_90], %267 {strides = array<i32>} : memref<2x1x128xf32, #tpu.memory_space<vmem>>, vector<2x1x128xf32>,
    return
  }
  func.func @transform_0(%arg0: i32) -> (i32, i32, i32) {
    %c0_i32 = arith.constant 0 : i32
    %c0_i32_0 = arith.constant 0 : i32
    %c0_i32_1 = arith.constant 0 : i32
    return %arg0, %c0_i32, %c0_i32_0 : i32, i32, i32
  }
  func.func @transform_1(%arg0: i32) -> (i32, i32, i32) {
    %c0_i32 = arith.constant 0 : i32
    %c0_i32_0 = arith.constant 0 : i32
    %c0_i32_1 = arith.constant 0 : i32
    return %arg0, %c0_i32, %c0_i32_0 : i32, i32, i32
  }
  func.func @transform_2(%arg0: i32) -> (i32, i32, i32) {
    %c0_i32 = arith.constant 0 : i32
    %c0_i32_0 = arith.constant 0 : i32
    %c0_i32_1 = arith.constant 0 : i32
    return %arg0, %c0_i32, %c0_i32_0 : i32, i32, i32
  }
  func.func @transform_3(%arg0: i32) -> (i32, i32, i32) {
    %c0_i32 = arith.constant 0 : i32
    %c0_i32_0 = arith.constant 0 : i32
    %c0_i32_1 = arith.constant 0 : i32
    return %arg0, %c0_i32, %c0_i32_0 : i32, i32, i32
  }
}

</mosaic_0001>

<bundles_post_ra>
// kernel: tpu_custom_call.1
= control target key start
LH: loop header
LB: loop body
LE: loop exit
PB: predicated region body
PF: predicated region fallthrough
CT: control target
= control target key end

     0   :  { %8 = vsyncpa [#allocation3], 0  ;;  %s1664_s0 = inlined_call_operand.vmem [shape: f32[4,8,128], index: 0, kind: input, shape index: {}]   ;;  %s1665_s1 = inlined_call_operand.vmem [shape: s32[4,8,1], index: 1, kind: input, shape index: {}]   ;;  %s1666_s2 = inlined_call_operand.vmem [shape: s32[4,1,8], index: 2, kind: input, shape index: {}]   ;;  %s1667_s3 = inlined_call_operand.hbm [shape: f32[4,1,128], index: 3, kind: output, shape index: {}]  }
   0x1   :  { %10 = vsyncpa [#allocation3 + $0x1], 0  ;;  %s1326_s12 = smov 0   ;;  %s1328_s13 = smov 0  }
   0x2   :  { %s1330_s14 = smov 0   ;;  %s1332_s15 = smov 0  }
   0x3 LB: > { %s1117_s16 = sadd.s32 4294967295, %s1299_s15   ;;  %s1118_s17 = sadd.s32 4294967294, %s1299_s15   ;;  %s1299_s15 = sphi %s1332_s15, %s1673_s15   ;;  %s1295_s14 = sphi %s1330_s14, %s1672_s14   ;;  %s1291_s13 = sphi %s1328_s13, %s1671_s13   ;;  %s1287_s12 = sphi %s1326_s12, %s1670_s12  }
   0x4   : > { %s1349_s18 = sadd.s32 1, %s1299_s15   ;;  %s101_s19 = sadd.s32 1, %s1295_s14 }
   0x5   : > { %s98_s20 = ssub.s32 %s1299_s15, %s1349_s18  ;;  %p111_p0 = scmp.ne.s32.totalorder %s1295_s14, %s1291_s13 }
   0x6   : > { %p99_p1 = scmp.eq.s32.totalorder %s98_s20, 0  ;;  %p112_p2 = scmp.eq.s32.totalorder %s1117_s16, 1 }
   0x7   : > { %p117_p3 = scmp.ne.s32.totalorder %s1291_s13, %s1287_s12  ;;  %p118_p4 = scmp.eq.s32.totalorder %s1118_s17, 1 }
   0x8   : > { %s1359_s21 = scalar_select %p99_p1, %s1295_s14, %s101_s19  }
   0x9   : > { %p1361_p5 = por %p112_p2, %p111_p0  ;;  %p1365_p6 = por %p118_p4, %p117_p3 }
   0xa   : > { %p1121_p7 = scmp.ge.s32.totalorder %s1299_s15, 1  ;;  %p162_p8 = scmp.lt.s32.totalorder %s1299_s15, 3 }
   0xc   : > { %p163_p9 = pnand %p1121_p7, %p162_p8 }
   0xd   : > { %s1371_s24 = sshll.u32 (!%p163_p9), %s1117_s16, 1  ;;  %s192_s9 = sand.u32 (!%p163_p9), 1, %s1291_s13  }
   0xe   : > { %166 = sbr.rel (%p163_p9) target bundleno = 756 (0x2f4), region = 32  ;;  %p196_p10 = scmp.lt.s32.totalorder (!%p163_p9), %s1371_s24, 3 }
   0xf   : > { %s1122_s10 = sshll.u32 (!%p163_p9), %s192_s9, 1  ;;  %s1031_s17 = scalar_lea.hbm (!%p163_p9), %s1667_s3, %s1371_s24 }
  0x10   : > { %s194_s19 = scalar_lea.vmem (!%p163_p9), [#allocation2], %s1122_s10  ;;  %s1257_s30 = scalar_lea.hbm (!%p163_p9), %s1667_s3, 4 }
  0x11   : > { %s1032_s20 = sshll.u32 (!%p163_p9), %s194_s19, 4  ;;  %s1033_s20 = int_to_ptr.vmem [resolvable:$true] %s1032_s20 }
  0x13   : > { %v1301_v0 = vmov 0   ;;  %s197_s25 = scalar_select %p196_p10, %s1371_s24, 3  ;;  %v1302_v6 = vmov 1.0   ;;  %v418_v10 = vlaneseq  ;;  %vm359_vm10 = vcmask 64512  }
  0x14   : > { %1224 = vset.pattern.permute.xlu0 %v1301_v0  ;;  %1225 = vset.pattern.permute.xlu2 %v1301_v0  ;;  %s1021_s24 = scalar_lea.sflag [#allocation3], %s192_s9 }
  0x15   : > { %1226 = vset.pattern.permute.xlu1 %v1301_v0  ;;  %s1124_s26 = sshll.u32 %s197_s25, 3  ;;  %s1386_s8 = scalar_lea.vmem %s1666_s2, %s197_s25  ;;  %v419_v11 = vshrl.u32 %v418_v10, 7 }
  0x16   : > { %s199_s29 = scalar_lea.vmem %s1664_s0, %s1124_s26  ;;  %s205_s5 = scalar_lea.vmem %s1665_s1, %s1124_s26  ;;  %v1398_v34 = vld [vmem:[%s1386_s8] ss:$0 sm:$0xff]  ;;  %v1418_v49 = vld [vmem:[%s1386_s8 + $0x1] ss:$0 sm:$0xff] }
  0x17   : > { %v213_v1 = vld [vmem:[%s199_s29] sm:$0xff]  ;;  %v214_v2 = vld [vmem:[%s199_s29 + $0x8] sm:$0xff]  ;;  %vm420_vm0 = vcmp.eq.s32.totalorder %v419_v11, 0  ;;  %vm490_vm1 = vcmp.eq.s32.totalorder %v419_v11, 1  ;;  %vm554_vm2 = vcmp.eq.s32.totalorder %v419_v11, 2  ;;  %vm618_vm3 = vcmp.eq.s32.totalorder %v419_v11, 3 }
  0x18   : > { %v215_v3 = vld [vmem:[%s205_s5] sm:$0xff]  ;;  %v229_v4 = vmul.f32 %v213_v1, %v213_v1  ;;  %290 = vmatpush.xpose.msra.mxu2 %v213_v1  ;;  %310 = vmatpush.xpose.msra.mxu3 %v214_v2  ;;  %v230_v5 = vmul.f32 %v214_v2, %v214_v2  ;;  %v216_v7 = vld [vmem:[%s205_s5 + $0x8] sm:$0xff]  ;;  %vm682_vm4 = vcmp.eq.s32.totalorder %v419_v11, 4  ;;  %vm746_vm5 = vcmp.eq.s32.totalorder %v419_v11, 5  ;;  %s1034_s25 = sshll.u32 %s1031_s17, 4  ;;  %s1035_s25 = int_to_ptr.hbm [resolvable:$true] %s1034_s25 }
  0x19   : > { %220 = vperm.xlu0 %1224, %v215_v3   ;;  %vm810_vm6 = vcmp.eq.s32.totalorder %v419_v11, 6  ;;  %vm874_vm7 = vcmp.eq.s32.totalorder %v419_v11, 7  ;;  %s1251_s26 = sshra.s32 %s1035_s25, 4  ;;  %s1252_s26 = int_to_ptr.hbm [resolvable:$true] %s1251_s26 }
  0x1a   : > { %231 = vadd.xlane.f32.xlu1 %v229_v4  ;;  %250 = vmatpush.xpose.msra.mxu0 %v229_v4  ;;  %s1253_s27 = scalar_lea.hbm %s1252_s26, 2  ;;  %p1258_p0 = scmp.lt.s32.totalorder %s1252_s26, %s1667_s3 }
  0x1b   : > { %291 = vmatmul.f32.vlgmr.msra.gmra.mxu2 %v213_v1  ;;  %311 = vmatmul.f32.vlgmr.msra.gmra.mxu3 %v214_v2  ;;  %p1254_p11 = scmp.ne.s32.totalorder %s1252_s26, %s1253_s27  ;;  %p1259_p1 = scmp.lt.s32.totalorder %s1257_s30, %s1253_s27 }
  0x1c   : > { %270 = vmatpush.xpose.msra.mxu1 %v230_v5  ;;  %1141 = vmatpush.msk.msrb.mxu2 %vm554_vm2, %v1302_v6 }
  0x1d   : > { %251 = vmatmul.f32.vlgmr.msra.gmra.mxu0 %v1302_v6  ;;  %1147 = vmatpush.msk.msrb.mxu3 %vm618_vm3, %v1302_v6  ;;  %p1255_p12 = pnand %p1254_p11, %p1361_p5  ;;  %p1260_p2 = por %p1259_p1, %p1258_p0 }
  0x1e   : > { %1129 = vmatpush.msk.msrb.mxu0 %vm420_vm0, %v1302_v6  ;;  %1165 = vmatpush.msk.msra.mxu2 %vm810_vm6, %v1302_v6 }
  0x1f   : > { %271 = vmatmul.f32.vlgmr.msra.gmra.mxu1 %v1302_v6  ;;  %1171 = vmatpush.msk.msra.mxu3 %vm874_vm7, %v1302_v6  ;;  %p1256_p13 = pneg %p1255_p12 }
  0x20   : > { %1135 = vmatpush.msk.msrb.mxu1 %vm490_vm1, %v1302_v6  ;;  %1153 = vmatpush.msk.msra.mxu0 %vm682_vm4, %v1302_v6 }
  0x21   : > { %223 = vperm.xlu0 %1224, %v216_v7   ;;  %p1261_p3 = pnand %p1260_p2, %p1256_p13 }
  0x22   : > { %233 = vadd.xlane.f32.xlu1 %v230_v5  ;;  %1159 = vmatpush.msk.msra.mxu1 %vm746_vm5, %v1302_v6 }
  0x8b   : > { %v1400_v37 = vpop.permute.xlu0 %220 }
  0x8c   : > { %vm227_vm9 = vcmp.eq.s32.totalorder %v1400_v37, %v1398_v34 }
  0x8d   : > { %v232_v8 = vpop.xlane.xlu1 %231 }
  0x8e   : > { %317 = vperm.xlu2 %1225, %v232_v8  }
  0x93   : > { %v1420_v51 = vpop.permute.xlu0 %223 }
  0x94   : > { %vm228_vm14 = vcmp.eq.s32.totalorder %v1420_v51, %v1418_v49 }
  0x95   : > { %v234_v9 = vpop.xlane.xlu1 %233 }
  0x96   : > { %322 = vperm.xlu2 %1225, %v234_v9  }
  0x9a   : > { %v252_v12 = vpop.f32.mrf.mxu0 }
  0x9b   : > { %v325_v14 = vperm.slane %v252_v12, 0 }
  0x9c   : > { %v272_v18 = vpop.f32.mrf.mxu1 }
  0x9d   : > { %v326_v22 = vperm.slane %v272_v18, 0 }
  0x9e   : > { %v292_v13 = vpop.f32.mrf.mxu2  ;;  %v312_v20 = vpop.f32.mrf.mxu3 }
  0x9f   : > { %v329_v15 = vmul.f32 2.0, %v292_v13  ;;  %v330_v23 = vmul.f32 2.0, %v312_v20  ;;  %v1456_v13 = vand.u32 127, %v418_v10 }
  0xa1   : > { %vm1008_vm15 = vcmp.eq.s32.totalorder %v1456_v13, 2  ;;  %vm1003_vm0 = vcmp.eq.s32.totalorder %v1456_v13, 1 }
  0xe8   : > { %v318_v16 = vpop.permute.xlu2 %317 }
  0xe9   : > { %v327_v17 = vadd.f32 %v325_v14, %v318_v16 }
  0xeb   : > { %v331_v19 = vsub.f32 %v327_v17, %v329_v15 }
  0xed   : > { %v333_v21 = vmax.f32 %v331_v19, 0.0 }
  0xef   : > { %1229 = vrsqrt.f32 %v333_v21  ;;  %vm342_vm8 = vcmp.eq.f32.partialorder %v333_v21, inf  ;;  %v345_v40 = vand.u32 2147483648, %v333_v21  ;;  %vm344_vm11 = vcmp.eq.f32.partialorder %v333_v21, 0.0 }
  0xf0   : > { %v323_v24 = vpop.permute.xlu2 %322 }
  0xf1   : > { %v328_v25 = vadd.f32 %v326_v22, %v323_v24 }
  0xf3   : > { %v332_v26 = vsub.f32 %v328_v25, %v330_v23 }
  0xf5   : > { %v1230_v27 = vpop.eup %1229  ;;  %v334_v28 = vmax.f32 %v332_v26, 0.0 }
  0xf6   : > { %v336_v29 = vmul.f32 %v1230_v27, %v333_v21 }
  0xf7   : > { %1231 = vrsqrt.f32 %v334_v28  ;;  %vm354_vm12 = vcmp.eq.f32.partialorder %v334_v28, inf  ;;  %v357_v52 = vand.u32 2147483648, %v334_v28  ;;  %vm356_vm13 = vcmp.eq.f32.partialorder %v334_v28, 0.0 }
  0xf8   : > { %v337_v30 = vmul.f32 %v1230_v27, %v336_v29 }
  0xfa   : > { %v338_v31 = vmul.f32 0.5, %v337_v30 }
  0xfc   : > { %v339_v32 = vsub.f32 1.5, %v338_v31 }
  0xfd   : > { %v1232_v33 = vpop.eup %1231 }
  0xfe   : > { %v340_v35 = vmul.f32 %v1230_v27, %v339_v32  ;;  %v348_v36 = vmul.f32 %v1232_v33, %v334_v28 }
 0x100   : > { %v341_v38 = vmul.f32 %v340_v35, %v333_v21  ;;  %v349_v39 = vmul.f32 %v1232_v33, %v348_v36 }
 0x102   : > { %v343_v41 = vsel %vm342_vm8, %v333_v21, %v341_v38  ;;  %v350_v42 = vmul.f32 0.5, %v349_v39 }
 0x103   : > { %v1404_v43 = vsel %vm344_vm11, %v345_v40, %v343_v41 }
 0x104   : > { %v351_v44 = vsub.f32 1.5, %v350_v42  ;;  %v380_v45 = vsel %vm227_vm9, %v1404_v43, -1e+09  ;;  %v360_v46 = vsel %vm359_vm10, %v1404_v43, 0.0  ;;  %v388_v58 = vsel %vm227_vm9, 1e+09, %v1404_v43 }
 0x105   : > { %1130 = vmatmul.msk.f32.vlgmr.msrb.gmra.mxu0 %vm359_vm10, %v380_v45  ;;  %1136 = vmatmul.msk.f32.vlgmr.msrb.gmra.mxu1 %vm359_vm10, %v380_v45  ;;  %v382_v47 = vsel %vm359_vm10, %v380_v45, -inf  ;;  %v390_v59 = vsel %vm359_vm10, %v388_v58, inf }
 0x106   : > { %v352_v48 = vmul.f32 %v1232_v33, %v351_v44  ;;  %1142 = vmatmul.msk.f32.vlgmr.msrb.gmra.mxu2 %vm359_vm10, %v380_v45  ;;  %1148 = vmatmul.msk.f32.vlgmr.msrb.gmra.mxu3 %vm359_vm10, %v380_v45 }
 0x107   : > { %361 = vadd.xlane.f32.xlu0 %v360_v46  ;;  %383 = vmax.xlane.f32.xlu2 %v382_v47 }
 0x108   : > { %v353_v50 = vmul.f32 %v352_v48, %v334_v28 }
 0x10a   : > { %v355_v53 = vsel %vm354_vm12, %v334_v28, %v353_v50 }
 0x10b   : > { %v1422_v54 = vsel %vm356_vm13, %v357_v52, %v355_v53 }
 0x10c   : > { %v381_v55 = vsel %vm228_vm14, %v1422_v54, -1e+09  ;;  %v363_v56 = vsel %vm359_vm10, %v1422_v54, 0.0  ;;  %v389_v60 = vsel %vm228_vm14, 1e+09, %v1422_v54 }
 0x10d   : > { %364 = vadd.xlane.f32.xlu1 %v363_v56  ;;  %1131 = vmatmul.msk.f32.gmra.mxu0 %vm359_vm10, %v381_v55  ;;  %v385_v57 = vsel %vm359_vm10, %v381_v55, -inf  ;;  %v393_v61 = vsel %vm359_vm10, %v389_v60, inf }
 0x10e   : > { %1137 = vmatmul.msk.f32.gmra.mxu1 %vm359_vm10, %v381_v55  ;;  %1143 = vmatmul.msk.f32.gmra.mxu2 %vm359_vm10, %v381_v55 }
 0x10f   : > { %1149 = vmatmul.msk.f32.gmra.mxu3 %vm359_vm10, %v381_v55 }
 0x115   : > { %386 = vmax.xlane.f32.xlu1 %v385_v57  ;;  %1154 = vmatmul.msk.f32.vlgmr.msra.gmra.mxu0 %vm359_vm10, %v380_v45 }
 0x116   : > { %1160 = vmatmul.msk.f32.vlgmr.msra.gmra.mxu1 %vm359_vm10, %v380_v45  ;;  %1166 = vmatmul.msk.f32.vlgmr.msra.gmra.mxu2 %vm359_vm10, %v380_v45 }
 0x117   : > { %1172 = vmatmul.msk.f32.vlgmr.msra.gmra.mxu3 %vm359_vm10, %v380_v45 }
 0x11d   : > { %391 = vmin.xlane.f32.xlu1 %v390_v59  ;;  %1155 = vmatmul.msk.f32.gmra.mxu0 %vm359_vm10, %v381_v55 }
 0x11e   : > { %1161 = vmatmul.msk.f32.gmra.mxu1 %vm359_vm10, %v381_v55  ;;  %1167 = vmatmul.msk.f32.gmra.mxu2 %vm359_vm10, %v381_v55 }
 0x11f   : > { %1173 = vmatmul.msk.f32.gmra.mxu3 %vm359_vm10, %v381_v55 }
 0x125   : > { %394 = vmin.xlane.f32.xlu1 %v393_v61 }
 0x17a   : > { %v384_v17 = vpop.xlane.xlu2 %383  ;;  %v1485_v37 = vpop.xlane.xlu0 %361 }
 0x17b   : > { %v396_v21 = vadd.f32 0.2, %v384_v17 }
 0x180   : > { %v365_v62 = vpop.xlane.xlu1 %364 }
 0x181   : > { %v372_v63 = vrot.slane %v365_v62, 4 }
 0x182   : > { %v446_v0 = vpop.f32.mrf.mxu0  ;;  %v510_v1 = vpop.f32.mrf.mxu1 }
 0x183   : > { %v373_v2 = vadd.f32 %v372_v63, %v365_v62  ;;  %v447_v3 = vadd.f32 0.2, %v446_v0  ;;  %v511_v4 = vadd.f32 0.2, %v510_v1 }
 0x185   : > { %v374_v5 = vrot.slane %v373_v2, 2  ;;  %454 = vperm.xlu1 %1226, %v447_v3   ;;  %518 = vperm.xlu2 %1225, %v511_v4  }
 0x187   : > { %v375_v7 = vadd.f32 %v374_v5, %v373_v2 }
 0x188   : > { %v387_v8 = vpop.xlane.xlu1 %386 }
 0x189   : > { %v376_v9 = vrot.slane %v375_v7, 1  ;;  %v574_v11 = vpop.f32.mrf.mxu2  ;;  %v638_v12 = vpop.f32.mrf.mxu3  ;;  %v397_v31 = vadd.f32 0.2, %v387_v8 }
 0x18a   : > { %v639_v14 = vadd.f32 0.2, %v638_v12  ;;  %v575_v16 = vadd.f32 0.2, %v574_v11  ;;  %v449_v19 = vpop.f32.mrf.mxu0 }
 0x18b   : > { %v377_v15 = vadd.f32 %v376_v9, %v375_v7  ;;  %v513_v20 = vpop.f32.mrf.mxu1  ;;  %v450_v27 = vadd.f32 0.2, %v449_v19 }
 0x18c   : > { %646 = vperm.xlu0 %1224, %v639_v14   ;;  %v514_v25 = vadd.f32 0.2, %v513_v20  ;;  %v1477_v14 = vsel %vm227_vm9, 0.0, %v1302_v6 }
 0x18d   : > { %v379_v18 = vmul.f32 0.015625, %v377_v15  ;;  %582 = vperm.xlu2 %1225, %v575_v16  }
 0x18f   : > { %v1461_v22 = vsel %vm1008_vm15, %v379_v18, 0.0 }
 0x190   : > { %v392_v23 = vpop.xlane.xlu1 %391 }
 0x191   : > { %v398_v24 = vsub.f32 %v396_v21, %v392_v23  ;;  %v577_v10 = vpop.f32.mrf.mxu2 }
 0x192   : > { %v578_v26 = vadd.f32 0.2, %v577_v10  ;;  %v641_v30 = vpop.f32.mrf.mxu3  ;;  %v702_v33 = vpop.f32.mrf.mxu0 }
 0x193   : > { %v400_v28 = vmax.f32 %v398_v24, 0.0  ;;  %v766_v35 = vpop.f32.mrf.mxu1  ;;  %v642_v40 = vadd.f32 0.2, %v641_v30  ;;  %v703_v41 = vadd.f32 0.2, %v702_v33  ;;  %v1303_v24 = vmov 0.0  }
 0x194   : > { %587 = vperm.xlu1 %1226, %v578_v26   ;;  %523 = vperm.xlu0 %1224, %v514_v25   ;;  %v767_v44 = vadd.f32 0.2, %v766_v35 }
 0x195   : > { %v402_v29 = vrot.slane %v400_v28, 4  ;;  %459 = vperm.xlu2 %1225, %v450_v27  }
 0x197   : > { %v403_v32 = vadd.f32 %v402_v29, %v400_v28 }
 0x198   : > { %v395_v36 = vpop.xlane.xlu1 %394 }
 0x199   : > { %v404_v38 = vrot.slane %v403_v32, 2  ;;  %v399_v39 = vsub.f32 %v397_v31, %v395_v36  ;;  %v830_v53 = vpop.f32.mrf.mxu2 }
 0x19a   : > { %v894_v52 = vpop.f32.mrf.mxu3  ;;  %v831_v60 = vadd.f32 0.2, %v830_v53  ;;  %v705_v0 = vpop.f32.mrf.mxu0 }
 0x19b   : > { %v405_v42 = vadd.f32 %v404_v38, %v403_v32  ;;  %v401_v45 = vmax.f32 %v399_v39, 0.0  ;;  %v895_v57 = vadd.f32 0.2, %v894_v52  ;;  %v769_v63 = vpop.f32.mrf.mxu1  ;;  %v706_v4 = vadd.f32 0.2, %v705_v0 }
 0x19c   : > { %710 = vperm.xlu1 %1226, %v703_v41   ;;  %651 = vperm.xlu0 %1224, %v642_v40   ;;  %v770_v2 = vadd.f32 0.2, %v769_v63 }
 0x19d   : > { %v406_v46 = vrot.slane %v405_v42, 1  ;;  %v408_v47 = vrot.slane %v401_v45, 4  ;;  %774 = vperm.xlu2 %1225, %v767_v44  }
 0x19f   : > { %v407_v48 = vadd.f32 %v406_v46, %v405_v42  ;;  %v409_v50 = vadd.f32 %v408_v47, %v401_v45 }
 0x1a1   : > { %v414_v55 = vmul.f32 0.125, %v407_v48  ;;  %v410_v56 = vrot.slane %v409_v50, 2  ;;  %v833_v5 = vpop.f32.mrf.mxu2 }
 0x1a2   : > { %v834_v7 = vadd.f32 0.2, %v833_v5  ;;  %v897_v8 = vpop.f32.mrf.mxu3 }
 0x1a3   : > { %v1466_v58 = vsel %vm1003_vm0, %v414_v55, 0.0  ;;  %v411_v59 = vadd.f32 %v410_v56, %v409_v50  ;;  %v898_v9 = vadd.f32 0.2, %v897_v8 }
 0x1a4   : > { %902 = vperm.xlu0 %1224, %v895_v57  }
 0x1a5   : > { %v412_v61 = vrot.slane %v411_v59, 1  ;;  %838 = vperm.xlu2 %1225, %v831_v60   ;;  %v1522_v60 = vsel %vm228_vm14, 0.0, %v1302_v6 }
 0x1a7   : > { %v413_v62 = vadd.f32 %v412_v61, %v411_v59 }
 0x1a9   : > { %v415_v1 = vmul.f32 0.125, %v413_v62 }
 0x1ab   : > { %v1470_v3 = vsel %vm1003_vm0, %v415_v1, 0.0 }
 0x1ac   : > { %779 = vperm.xlu0 %1224, %v770_v2  }
 0x1ad   : > { %715 = vperm.xlu2 %1225, %v706_v4  }
 0x1b5   : > { %843 = vperm.xlu2 %1225, %v834_v7  }
 0x1bd   : > { %907 = vperm.xlu2 %1225, %v898_v9  }
 0x1df   : > { %v519_v11 = vpop.permute.xlu2 %518 }
 0x1e0   : > { %v526_v12 = vsub.f32 %v519_v11, %v1404_v43 }
 0x1e2   : > { %v528_v15 = vmul.f32 %v526_v12, %v1477_v14 }
 0x1e4   : > { %v530_v16 = vmax.f32 %v528_v15, 0.0 }
 0x1e6   : > { %v532_v17 = vsel %vm359_vm10, %v530_v16, 0.0  ;;  %vm540_vm4 = vcmp.gt.f32.partialorder %v530_v16, 0.0 }
 0x1e7   : > { %533 = vadd.xlane.f32.xlu2 %v532_v17  ;;  %v583_v18 = vpop.permute.xlu2 %582  ;;  %v1138_v47 = vsel %vm540_vm4, 1.0, %v1303_v24 }
 0x1e8   : > { %v590_v19 = vsub.f32 %v583_v18, %v1404_v43  ;;  %v546_v59 = vsel %vm359_vm10, %v1138_v47, 0.0 }
 0x1ea   : > { %v592_v20 = vmul.f32 %v590_v19, %v1477_v14 }
 0x1ec   : > { %v594_v21 = vmax.f32 %v592_v20, 0.0 }
 0x1ee   : > { %vm604_vm1 = vcmp.gt.f32.partialorder %v594_v21, 0.0  ;;  %v596_v52 = vsel %vm359_vm10, %v594_v21, 0.0 }
 0x1ef   : > { %v460_v23 = vpop.permute.xlu2 %459  ;;  %v1144_v10 = vsel %vm604_vm1, 1.0, %v1303_v24 }
 0x1f0   : > { %v610_v34 = vsel %vm359_vm10, %v1144_v10, 0.0  ;;  %v463_v61 = vsub.f32 %v460_v23, %v1422_v54 }
 0x1f1   : > { %611 = vadd.xlane.f32.xlu2 %v610_v34 }
 0x1f2   : > { %v465_v0 = vmul.f32 %v463_v61, %v1522_v60 }
 0x1f4   : > { %v467_v17 = vmax.f32 %v465_v0, 0.0 }
 0x1f6   : > { %vm477_vm1 = vcmp.gt.f32.partialorder %v467_v17, 0.0 }
 0x1f7   : > { %v455_v25 = vpop.permute.xlu1 %454  ;;  %v775_v26 = vpop.permute.xlu2 %774 }
 0x1f8   : > { %v462_v27 = vsub.f32 %v455_v25, %v1404_v43  ;;  %v782_v28 = vsub.f32 %v775_v26, %v1404_v43  ;;  %v471_v26 = vsel %vm359_vm10, %v467_v17, 0.0 }
 0x1fa   : > { %v464_v29 = vmul.f32 %v462_v27, %v1477_v14  ;;  %v1491_v30 = vmul.f32 %v782_v28, %v1477_v14 }
 0x1fc   : > { %v466_v31 = vmax.f32 %v464_v29, 0.0  ;;  %v786_v32 = vmax.f32 %v1491_v30, 0.0 }
 0x1fe   : > { %v647_v33 = vpop.permute.xlu0 %646  ;;  %v468_v35 = vsel %vm359_vm10, %v466_v31, 0.0  ;;  %vm476_vm2 = vcmp.gt.f32.partialorder %v466_v31, 0.0  ;;  %vm796_vm3 = vcmp.gt.f32.partialorder %v786_v32, 0.0 }
 0x1ff   : > { %v654_v36 = vsub.f32 %v647_v33, %v1404_v43  ;;  %v839_v38 = vpop.permute.xlu2 %838  ;;  %469 = vadd.xlane.f32.xlu0 %v468_v35  ;;  %v1132_v39 = vsel %vm476_vm2, 1.0, %v1303_v24  ;;  %v1500_v40 = vsel %vm796_vm3, 1.0, %v1303_v24 }
 0x200   : > { %v846_v41 = vsub.f32 %v839_v38, %v1404_v43  ;;  %v482_v42 = vsel %vm359_vm10, %v1132_v39, 0.0 }
 0x201   : > { %483 = vadd.xlane.f32.xlu1 %v482_v42  ;;  %v656_v44 = vmul.f32 %v654_v36, %v1477_v14 }
 0x202   : > { %v1506_v45 = vmul.f32 %v846_v41, %v1477_v14 }
 0x203   : > { %v658_v53 = vmax.f32 %v656_v44, 0.0 }
 0x204   : > { %v850_v46 = vmax.f32 %v1506_v45, 0.0 }
 0x205   : > { %vm668_vm6 = vcmp.gt.f32.partialorder %v658_v53, 0.0  ;;  %v660_v7 = vsel %vm359_vm10, %v658_v53, 0.0 }
 0x206   : > { %v588_v48 = vpop.permute.xlu1 %587  ;;  %v524_v50 = vpop.permute.xlu0 %523  ;;  %vm860_vm5 = vcmp.gt.f32.partialorder %v850_v46, 0.0  ;;  %v1150_v63 = vsel %vm668_vm6, 1.0, %v1303_v24 }
 0x207   : > { %v527_v55 = vsub.f32 %v524_v50, %v1422_v54  ;;  %v716_v56 = vpop.permute.xlu2 %715  ;;  %597 = vadd.xlane.f32.xlu0 %v596_v52  ;;  %v1515_v57 = vsel %vm860_vm5, 1.0, %v1303_v24  ;;  %v591_v1 = vsub.f32 %v588_v48, %v1422_v54  ;;  %v674_v9 = vsel %vm359_vm10, %v1150_v63, 0.0 }
 0x208   : > { %v719_v18 = vsub.f32 %v716_v56, %v1422_v54  ;;  %v1133_v63 = vsel %vm477_vm1, 1.0, %v1303_v24 }
 0x209   : > { %547 = vadd.xlane.f32.xlu1 %v546_v59  ;;  %v529_v62 = vmul.f32 %v527_v55, %v1522_v60  ;;  %v1539_v15 = vmul.f32 %v591_v1, %v1522_v60 }
 0x20a   : > { %v721_v28 = vmul.f32 %v719_v18, %v1522_v60 }
 0x20b   : > { %v531_v2 = vmax.f32 %v529_v62, 0.0  ;;  %v595_v34 = vmax.f32 %v1539_v15, 0.0 }
 0x20c   : > { %v723_v42 = vmax.f32 %v721_v28, 0.0 }
 0x20d   : > { %vm541_vm7 = vcmp.gt.f32.partialorder %v531_v2, 0.0  ;;  %vm605_vm12 = vcmp.gt.f32.partialorder %v595_v34, 0.0 }
 0x20e   : > { %v711_v4 = vpop.permute.xlu1 %710  ;;  %v652_v5 = vpop.permute.xlu0 %651  ;;  %v1139_v10 = vsel %vm541_vm7, 1.0, %v1303_v24  ;;  %v1145_v48 = vsel %vm605_vm12, 1.0, %v1303_v24  ;;  %vm733_vm0 = vcmp.gt.f32.partialorder %v723_v42, 0.0  ;;  %vm1000_vm7 = vcmp.eq.s32.totalorder %v1456_v13, 0 }
 0x20f   : > { %v718_v6 = vsub.f32 %v711_v4, %v1404_v43  ;;  %v655_v49 = vsub.f32 %v652_v5, %v1422_v54  ;;  %v844_v51 = vpop.permute.xlu2 %843  ;;  %661 = vadd.xlane.f32.xlu0 %v660_v7  ;;  %v549_v36 = vsel %vm359_vm10, %v1139_v10, 0.0  ;;  %v613_v56 = vsel %vm359_vm10, %v1145_v48, 0.0 }
 0x210   : > { %v847_v8 = vsub.f32 %v844_v51, %v1422_v54  ;;  %v1157_v61 = vsel %vm733_vm0, 1.0, %v1303_v24  ;;  %v599_v4 = vsel %vm359_vm10, %v595_v34, 0.0  ;;  %v802_v5 = vsel %vm359_vm10, %v1500_v40, 0.0 }
 0x211   : > { %v1535_v11 = vmul.f32 %v718_v6, %v1477_v14  ;;  %v657_v12 = vmul.f32 %v655_v49, %v1522_v60  ;;  %675 = vadd.xlane.f32.xlu1 %v674_v9  ;;  %v741_v0 = vsel %vm359_vm10, %v1157_v61, 0.0  ;;  %v866_v6 = vsel %vm359_vm10, %v1515_v57, 0.0 }
 0x212   : > { %v1542_v16 = vmul.f32 %v847_v8, %v1522_v60  ;;  %v852_v51 = vsel %vm359_vm10, %v850_v46, 0.0 }
 0x213   : > { %v659_v19 = vmax.f32 %v657_v12, 0.0  ;;  %v722_v20 = vmax.f32 %v1535_v11, 0.0 }
 0x214   : > { %v851_v21 = vmax.f32 %v1542_v16, 0.0 }
 0x215   : > { %v663_v23 = vsel %vm359_vm10, %v659_v19, 0.0  ;;  %vm732_vm8 = vcmp.gt.f32.partialorder %v722_v20, 0.0  ;;  %vm669_vm11 = vcmp.gt.f32.partialorder %v659_v19, 0.0 }
 0x216   : > { %664 = vadd.xlane.f32.xlu2 %v663_v23  ;;  %v903_v25 = vpop.permute.xlu0 %902  ;;  %v1156_v27 = vsel %vm732_vm8, 1.0, %v1303_v24  ;;  %vm861_vm9 = vcmp.gt.f32.partialorder %v851_v21, 0.0  ;;  %v1151_v41 = vsel %vm669_vm11, 1.0, %v1303_v24  ;;  %v855_v7 = vsel %vm359_vm10, %v851_v21, 0.0 }
 0x217   : > { %v910_v29 = vsub.f32 %v903_v25, %v1404_v43  ;;  %v908_v31 = vpop.permute.xlu2 %907  ;;  %472 = vadd.xlane.f32.xlu0 %v471_v26  ;;  %v1169_v33 = vsel %vm861_vm9, 1.0, %v1303_v24  ;;  %v677_v47 = vsel %vm359_vm10, %v1151_v41, 0.0  ;;  %v738_v30 = vsel %vm359_vm10, %v1156_v27, 0.0 }
 0x218   : > { %v911_v35 = vsub.f32 %v908_v31, %v1422_v54  ;;  %v869_v40 = vsel %vm359_vm10, %v1169_v33, 0.0 }
 0x219   : > { %v1558_v38 = vmul.f32 %v910_v29, %v1477_v14  ;;  %550 = vadd.xlane.f32.xlu1 %v549_v36  ;;  %v535_v14 = vsel %vm359_vm10, %v531_v2, 0.0  ;;  %v727_v2 = vsel %vm359_vm10, %v723_v42, 0.0 }
 0x21a   : > { %v913_v39 = vmul.f32 %v911_v35, %v1522_v60 }
 0x21b   : > { %v914_v43 = vmax.f32 %v1558_v38, 0.0 }
 0x21c   : > { %v915_v44 = vmax.f32 %v913_v39, 0.0 }
 0x21d   : > { %vm924_vm13 = vcmp.gt.f32.partialorder %v914_v43, 0.0  ;;  %v916_v11 = vsel %vm359_vm10, %v914_v43, 0.0 }
 0x21e   : > { %678 = vadd.xlane.f32.xlu2 %v677_v47  ;;  %v780_v50 = vpop.permute.xlu0 %779  ;;  %vm925_vm14 = vcmp.gt.f32.partialorder %v915_v44, 0.0  ;;  %v1174_v52 = vsel %vm924_vm13, 1.0, %v1303_v24  ;;  %v919_v8 = vsel %vm359_vm10, %v915_v44, 0.0 }
 0x21f   : > { %v783_v53 = vsub.f32 %v780_v50, %v1422_v54  ;;  %536 = vadd.xlane.f32.xlu0 %v535_v14  ;;  %v1175_v55 = vsel %vm925_vm14, 1.0, %v1303_v24  ;;  %v485_v54 = vsel %vm359_vm10, %v1133_v63, 0.0  ;;  %v930_v57 = vsel %vm359_vm10, %v1174_v52, 0.0 }
 0x220   : > { %v933_v49 = vsel %vm359_vm10, %v1175_v55, 0.0 }
 0x221   : > { %v785_v59 = vmul.f32 %v783_v53, %v1522_v60  ;;  %614 = vadd.xlane.f32.xlu1 %v613_v56  ;;  %v788_v60 = vsel %vm359_vm10, %v786_v32, 0.0 }
 0x223   : > { %v787_v62 = vmax.f32 %v785_v59, 0.0 }
 0x225   : > { %vm797_vm2 = vcmp.gt.f32.partialorder %v787_v62, 0.0  ;;  %v791_v9 = vsel %vm359_vm10, %v787_v62, 0.0 }
 0x226   : > { %742 = vadd.xlane.f32.xlu2 %v741_v0  ;;  %v1163_v1 = vsel %vm797_vm2, 1.0, %v1303_v24  ;;  %v724_v24 = vsel %vm359_vm10, %v722_v20, 0.0 }
 0x227   : > { %486 = vadd.xlane.f32.xlu0 %v485_v54  ;;  %v805_v32 = vsel %vm359_vm10, %v1163_v1, 0.0  ;;  %vm1013_vm10 = vcmp.eq.s32.totalorder %v1456_v13, 3 }
 0x229   : > { %728 = vadd.xlane.f32.xlu1 %v727_v2 }
 0x22e   : > { %789 = vadd.xlane.f32.xlu2 %v788_v60 }
 0x22f   : > { %600 = vadd.xlane.f32.xlu0 %v599_v4 }
 0x231   : > { %803 = vadd.xlane.f32.xlu1 %v802_v5 }
 0x236   : > { %856 = vadd.xlane.f32.xlu2 %v855_v7 }
 0x237   : > { %725 = vadd.xlane.f32.xlu0 %v724_v24 }
 0x239   : > { %867 = vadd.xlane.f32.xlu1 %v866_v6 }
 0x23f   : > { %739 = vadd.xlane.f32.xlu0 %v738_v30 }
 0x241   : > { %806 = vadd.xlane.f32.xlu1 %v805_v32 }
 0x247   : > { %934 = vadd.xlane.f32.xlu0 %v933_v49 }
 0x249   : > { %870 = vadd.xlane.f32.xlu1 %v869_v40 }
 0x24f   : > { %853 = vadd.xlane.f32.xlu0 %v852_v51 }
 0x251   : > { %931 = vadd.xlane.f32.xlu1 %v930_v57 }
 0x257   : > { %920 = vadd.xlane.f32.xlu0 %v919_v8 }
 0x259   : > { %792 = vadd.xlane.f32.xlu1 %v791_v9 }
 0x25a   : > { %v534_v16 = vpop.xlane.xlu2 %533 }
 0x261   : > { %917 = vadd.xlane.f32.xlu1 %v916_v11 }
 0x264   : > { %v612_v27 = vpop.xlane.xlu2 %611 }
 0x272   : > { %v470_v12 = vpop.xlane.xlu0 %469 }
 0x273   : > { %v538_v17 = vadd.f32 %v534_v16, %v470_v12  ;;  %v366_v12 = vrot.slane %v1485_v37, 4 }
 0x274   : > { %v484_v15 = vpop.xlane.xlu1 %483 }
 0x27a   : > { %v598_v45 = vpop.xlane.xlu0 %597 }
 0x27b   : > { %v602_v18 = vadd.f32 %v598_v45, %v538_v17 }
 0x27c   : > { %v548_v46 = vpop.xlane.xlu1 %547 }
 0x27d   : > { %v552_v42 = vadd.f32 %v548_v46, %v484_v15 }
 0x27f   : > { %v616_v48 = vadd.f32 %v612_v27, %v552_v42 }
 0x282   : > { %v662_v19 = vpop.xlane.xlu0 %661 }
 0x283   : > { %v666_v20 = vadd.f32 %v662_v19, %v602_v18 }
 0x284   : > { %v676_v21 = vpop.xlane.xlu1 %675 }
 0x285   : > { %v680_v14 = vadd.f32 %v676_v21, %v616_v48  ;;  %v367_v21 = vadd.f32 %v366_v12, %v1485_v37 }
 0x289   : > { %v665_v31 = vpop.xlane.xlu2 %664 }
 0x28a   : > { %v473_v23 = vpop.xlane.xlu0 %472 }
 0x28c   : > { %v551_v10 = vpop.xlane.xlu1 %550 }
 0x291   : > { %v679_v39 = vpop.xlane.xlu2 %678 }
 0x292   : > { %v537_v34 = vpop.xlane.xlu0 %536 }
 0x293   : > { %v539_v54 = vadd.f32 %v537_v34, %v473_v23 }
 0x294   : > { %v615_v25 = vpop.xlane.xlu1 %614 }
 0x299   : > { %v743_v50 = vpop.xlane.xlu2 %742 }
 0x29a   : > { %v487_v26 = vpop.xlane.xlu0 %486 }
 0x29b   : > { %v553_v38 = vadd.f32 %v551_v10, %v487_v26 }
 0x29c   : > { %v729_v28 = vpop.xlane.xlu1 %728 }
 0x29d   : > { %v617_v41 = vadd.f32 %v615_v25, %v553_v38 }
 0x29f   : > { %v681_v47 = vadd.f32 %v679_v39, %v617_v41 }
 0x2a1   : > { %v745_v52 = vadd.f32 %v743_v50, %v681_v47  ;;  %v790_v5 = vpop.xlane.xlu2 %789 }
 0x2a2   : > { %v601_v29 = vpop.xlane.xlu0 %600 }
 0x2a3   : > { %v603_v60 = vadd.f32 %v601_v29, %v539_v54 }
 0x2a4   : > { %v804_v33 = vpop.xlane.xlu1 %803 }
 0x2a5   : > { %v667_v49 = vadd.f32 %v665_v31, %v603_v60 }
 0x2a7   : > { %v731_v11 = vadd.f32 %v729_v28, %v667_v49 }
 0x2a9   : > { %v857_v18 = vpop.xlane.xlu2 %856 }
 0x2aa   : > { %v726_v35 = vpop.xlane.xlu0 %725 }
 0x2ab   : > { %v730_v15 = vadd.f32 %v726_v35, %v666_v20 }
 0x2ac   : > { %v868_v36 = vpop.xlane.xlu1 %867 }
 0x2ad   : > { %v794_v23 = vadd.f32 %v790_v5, %v730_v15 }
 0x2b2   : > { %v740_v43 = vpop.xlane.xlu0 %739 }
 0x2b3   : > { %v744_v53 = vadd.f32 %v740_v43, %v680_v14 }
 0x2b4   : > { %v807_v44 = vpop.xlane.xlu1 %806 }
 0x2b5   : > { %v809_v55 = vadd.f32 %v807_v44, %v745_v52  ;;  %v808_v62 = vadd.f32 %v804_v33, %v744_v53  ;;  %v368_v33 = vrot.slane %v367_v21, 2 }
 0x2b7   : > { %v872_v2 = vadd.f32 %v868_v36, %v808_v62  ;;  %v369_v42 = vadd.f32 %v368_v33, %v367_v21 }
 0x2ba   : > { %v935_v59 = vpop.xlane.xlu0 %934 }
 0x2bc   : > { %v871_v56 = vpop.xlane.xlu1 %870 }
 0x2bd   : > { %v873_v61 = vadd.f32 %v871_v56, %v809_v55 }
 0x2bf   : > { %v937_v63 = vadd.f32 %v935_v59, %v873_v61  ;;  %v370_v59 = vrot.slane %v369_v42, 1 }
 0x2c1   : > { %v956_v0 = vrot.slane %v937_v63, 4 }
 0x2c2   : > { %v854_v30 = vpop.xlane.xlu0 %853 }
 0x2c3   : > { %v957_v1 = vadd.f32 %v956_v0, %v937_v63  ;;  %v858_v26 = vadd.f32 %v854_v30, %v794_v23  ;;  %v371_v30 = vadd.f32 %v370_v59, %v369_v42 }
 0x2c4   : > { %v932_v4 = vpop.xlane.xlu1 %931 }
 0x2c5   : > { %v958_v7 = vrot.slane %v957_v1, 2  ;;  %v936_v24 = vadd.f32 %v932_v4, %v872_v2  ;;  %v378_v15 = vmul.f32 0.015625, %v371_v30 }
 0x2c7   : > { %v959_v6 = vadd.f32 %v958_v7, %v957_v1  ;;  %v950_v32 = vrot.slane %v936_v24, 4 }
 0x2c9   : > { %v960_v40 = vrot.slane %v959_v6, 1  ;;  %v951_v51 = vadd.f32 %v950_v32, %v936_v24 }
 0x2ca   : > { %v921_v34 = vpop.xlane.xlu0 %920 }
 0x2cb   : > { %v1598_v57 = vadd.f32 %v960_v40, %v959_v6  ;;  %v952_v8 = vrot.slane %v951_v51, 2 }
 0x2cc   : > { %v793_v9 = vpop.xlane.xlu1 %792 }
 0x2cd   : > { %v965_v16 = vmax.f32 %v1598_v57, 1.0  ;;  %v953_v17 = vadd.f32 %v952_v8, %v951_v51  ;;  %v795_v45 = vadd.f32 %v793_v9, %v731_v11  ;;  %vm963_vm9 = vcmp.gt.f32.partialorder %v1598_v57, 0.0 }
 0x2cf   : > { %1233 = vrcp.f32 %v965_v16  ;;  %v954_v46 = vrot.slane %v953_v17, 1  ;;  %v859_v19 = vadd.f32 %v857_v18, %v795_v45  ;;  %v992_v43 = vand.u32 2147483648, %v965_v16 }
 0x2d0   : > { %v990_v50 = vand.u32 2147483647, %v965_v16  ;;  %vm986_vm4 = vweird.f32 %v965_v16 }
 0x2d1   : > { %v1603_v10 = vadd.f32 %v954_v46, %v953_v17  ;;  %v923_v25 = vadd.f32 %v921_v34, %v859_v19  ;;  %v993_v61 = vor.u32 1.1754944e-38, %v992_v43 }
 0x2d2   : > { %vm991_vm6 = vcmp.eq.f32.partialorder %v990_v50, 8.507059e+37 }
 0x2d3   : > { %v964_v20 = vmax.f32 %v1603_v10, 1.0  ;;  %v1610_v27 = vsel %vm1013_vm10, %v1603_v10, 0.0  ;;  %v944_v28 = vrot.slane %v923_v25, 4  ;;  %vm962_vm14 = vcmp.gt.f32.partialorder %v1603_v10, 0.0 }
 0x2d4   : > { %v918_v29 = vpop.xlane.xlu1 %917 }
 0x2d5   : > { %v1234_v31 = vpop.eup %1233  ;;  %1235 = vrcp.f32 %v964_v20  ;;  %v922_v37 = vadd.f32 %v918_v29, %v858_v26  ;;  %v945_v35 = vadd.f32 %v944_v28, %v923_v25  ;;  %v975_v2 = vand.u32 2147483647, %v964_v20 }
 0x2d6   : > { %v982_v36 = vmul.f32 %v1234_v31, %v965_v16  ;;  %vm987_vm3 = vweird.f32 %v1234_v31  ;;  %v977_v60 = vand.u32 2147483648, %v964_v20  ;;  %vm971_vm11 = vweird.f32 %v964_v20 }
 0x2d7   : > { %v938_v38 = vrot.slane %v922_v37, 4  ;;  %v946_v39 = vrot.slane %v945_v35, 2  ;;  %vm988_vm5 = vmor %vm986_vm4, %vm987_vm3  ;;  %vm976_vm13 = vcmp.eq.f32.partialorder %v975_v2, 8.507059e+37  ;;  %v1015_v16 = vsel %vm1013_vm10, %v1598_v57, 0.0 }
 0x2d8   : > { %v983_v41 = vsub.f32 1.0, %v982_v36  ;;  %v978_v32 = vor.u32 1.1754944e-38, %v977_v60 }
 0x2d9   : > { %v939_v44 = vadd.f32 %v938_v38, %v922_v37  ;;  %v947_v47 = vadd.f32 %v946_v39, %v945_v35 }
 0x2da   : > { %v984_v48 = vmul.f32 %v1234_v31, %v983_v41 }
 0x2db   : > { %v1236_v14 = vpop.eup %1235  ;;  %v940_v52 = vrot.slane %v939_v44, 2  ;;  %v948_v53 = vrot.slane %v947_v47, 1 }
 0x2dc   : > { %v985_v55 = vadd.f32 %v1234_v31, %v984_v48  ;;  %v967_v56 = vmul.f32 %v1236_v14, %v964_v20  ;;  %vm972_vm8 = vweird.f32 %v1236_v14 }
 0x2dd   : > { %v941_v62 = vadd.f32 %v940_v52, %v939_v44  ;;  %v949_v63 = vadd.f32 %v948_v53, %v947_v47  ;;  %vm973_vm12 = vmor %vm971_vm11, %vm972_vm8 }
 0x2de   : > { %v989_v0 = vsel %vm988_vm5, %v1234_v31, %v985_v55  ;;  %v968_v54 = vsub.f32 1.0, %v967_v56 }
 0x2df   : > { %v994_v1 = vsel %vm991_vm6, %v993_v61, %v989_v0  ;;  %v942_v5 = vrot.slane %v941_v62, 1 }
 0x2e0   : > { %v995_v4 = vmul.f32 %v994_v1, %v949_v63  ;;  %v969_v7 = vmul.f32 %v1236_v14, %v968_v54 }
 0x2e1   : > { %v943_v40 = vadd.f32 %v942_v5, %v941_v62 }
 0x2e2   : > { %v970_v24 = vadd.f32 %v1236_v14, %v969_v7  ;;  %v997_v6 = vsel %vm963_vm9, %v995_v4, 0.0 }
 0x2e3   : > { %v1002_v49 = vsel %vm1000_vm7, %v997_v6, 0.0 }
 0x2e4   : > { %v974_v51 = vsel %vm973_vm12, %v1236_v14, %v970_v24  ;;  %v1007_v8 = vadd.f32 %v1470_v3, %v1002_v49 }
 0x2e5   : > { %v979_v9 = vsel %vm976_vm13, %v978_v32, %v974_v51 }
 0x2e6   : > { %v980_v11 = vmul.f32 %v979_v9, %v943_v40  ;;  %v1012_v12 = vadd.f32 %v1461_v22, %v1007_v8  ;;  %v1009_v22 = vsel %vm1008_vm15, %v378_v15, 0.0 }
 0x2e8   : > { %v996_v17 = vsel %vm962_vm14, %v980_v11, 0.0  ;;  %v1017_v3 = vadd.f32 %v1015_v16, %v1012_v12 }
 0x2e9   : > { %v1001_v45 = vsel %vm1000_vm7, %v996_v17, 0.0 }
 0x2ea   : > { %v1006_v18 = vadd.f32 %v1466_v58, %v1001_v45  ;;  %1019 = vst [vmem:[%s194_s19 + $0x1] sm:$0x1] %v1017_v3 }
 0x2ec   : > { %v1011_v57 = vadd.f32 %v1009_v22, %v1006_v18 }
 0x2ee   : > { %v1016_v46 = vadd.f32 %v1610_v27, %v1011_v57 }
 0x2f0   : > { %1018 = vst [vmem:[%s194_s19] sm:$0x1] %v1016_v46 }
 0x2f1   : > { %1264 = shalt.err (!%p1261_p3)
}
 0x2f2   : > { %s1304_s6 = smov 16   ;;  %s1305_s7 = smov 1  }
 0x2f3   : > { %1180 = dma.vmem_to_hbm [thread:$0]  (%p1361_p5), %s1033_s20, 32, %s1035_s25, %s1021_s24, %s1304_s6, %s1304_s6, %s1305_s7  }
 0x2f4 PF: > { %p1186_p4 = scmp.ge.s32.totalorder %s1299_s15, 2  ;;  %s1049_s8 = sand.u32 1, %s1287_s12  }
 0x2f5   : > { %s1050_s9 = scalar_lea.sflag [#allocation3], %s1049_s8 }
 0x2f6   : > { %p1183_p7 = pnand %p1186_p4, %p1365_p6 }
 0x2f8   : > { %p1184_p8 = pneg %p1183_p7 }
 0x2fa   : > { %1282 = dma.done.wait (%p1184_p8), %s1050_s9, 32  }
 0x2fb   : > { %1284 = vsyncadd (%p1184_p8), %s1050_s9, 4294967264  ;;  %p13_p9 = scmp.ge.s32.totalorder %s1349_s18, 4   ;;  %s1670_s12 = smov %s1291_s13 }
 0x2fc   : > { %s1671_s13 = smov %s1295_s14  ;;  %s1672_s14 = smov %s1359_s21 }
 0x2fd   : > { %s1673_s15 = smov %s1349_s18  ;;  %15 = sbr.rel (!%p13_p9) target bundleno = 3 (0x3), region = 73 }
 0x302   :  { %1056 = vsyncpa [#allocation3], 1 }
 0x303   :  { %1058 = vsyncpa [#allocation3 + $0x1], 1 }

</bundles_post_ra>
